<compile_context>
chip_gen: v5e
topology: v5e:2x2
jax: 0.10.0
libtpu: 0.0.40
codegen_flags: <defaults>
</compile_context>

<pallas_src>
import jax
import jax.numpy as jnp
from jax.experimental import pallas as pl

# ---- small, TPU-friendly shapes implied by the forward pass -----------------
B, S, H, V = 4, 8, 128, 256          # batch, seq, hidden, vocab
SCALE = 20.0
MLM_PROB = 0.2
MASK_TOKEN_ID = 3
IGNORE_INDEX = -100


# =============================================================================
# Fused kernel: embedding gather + tied encoder + CLS pooling + MLM head/CE
#               + contrastive CE, single launch.
# =============================================================================
def _fused_kernel(ids_ref, labels_ref, e_ref, wenc_ref, benc_ref,
                  wmlm_ref, bmlm_ref,
                  loss_ref, pooled_ref, logits_ref, sim_ref):
    rows = ids_ref.shape[0]                       # 2*B*S stacked rows
    n_mlm = labels_ref.shape[0]                   # B*S MLM rows (the tail)

    # ---- embedding gather as a one-hot bf16 MXU matmul (E stays in VMEM) ----
    ids = ids_ref[...]                                            # (rows, 1) i32
    vocab_iota = jax.lax.broadcasted_iota(jnp.int32, (rows, V), 1)
    onehot = (vocab_iota == ids).astype(jnp.bfloat16)             # (rows, V)
    emb = jnp.dot(onehot, e_ref[...].astype(jnp.bfloat16),
                  preferred_element_type=jnp.float32)             # (rows, H) f32

    # ---- tied base-model body: tanh(x @ W_enc + b_enc), f32 accumulation ----
    h = jnp.dot(emb.astype(jnp.bfloat16), wenc_ref[...].astype(jnp.bfloat16),
                preferred_element_type=jnp.float32) + benc_ref[...]
    hidden = jnp.tanh(h)                                          # (rows, H) f32

    # ---- CLS pooling: stacked layout puts the B CLS rows first -------------
    pooled = hidden[:B, :]                                        # (B, H) f32
    pooled_ref[...] = pooled

    # ---- auxiliary MLM head + cross-entropy (ignore_index = -100) ----------
    hidden_mlm = hidden[n_mlm:, :]                                # (B*S, H)
    logits = jnp.dot(hidden_mlm.astype(jnp.bfloat16),
                     wmlm_ref[...].astype(jnp.bfloat16),
                     preferred_element_type=jnp.float32) + bmlm_ref[...]
    logits_ref[...] = logits                                      # (B*S, V)

    labels = labels_ref[...]                                      # (B*S, 1) i32
    row_max = jnp.max(logits, axis=-1, keepdims=True)
    lse = row_max + jnp.log(
        jnp.sum(jnp.exp(logits - row_max), axis=-1, keepdims=True))
    col_ids = jax.lax.broadcasted_iota(jnp.int32, (n_mlm, V), 1)
    correct = jnp.sum(jnp.where(col_ids == labels, logits, 0.0),
                      axis=-1, keepdims=True)
    valid = (labels != IGNORE_INDEX).astype(jnp.float32)
    lm_num = jnp.sum((lse - correct) * valid, keepdims=True)      # (1, 1)
    lm_den = jnp.maximum(jnp.sum(valid, keepdims=True), 1.0)      # (1, 1)
    lm_loss = lm_num / lm_den                                     # (1, 1)

    # ---- contrastive loss: sim = scale * cos_sim(pooled_b, pooled_a) -------
    # pooled_a == pooled_b (deterministic path) => sim is symmetric and
    # CE(sim.T, arange) == CE(sim, arange): compute the row CE once, double it
    # (avoids the cross-sublane axis=0 reduction entirely).
    sq = jnp.sum(pooled * pooled, axis=-1, keepdims=True)
    pn = pooled * jax.lax.rsqrt(jnp.maximum(sq, 1e-24))
    sim = SCALE * jnp.dot(pn, pn.T, preferred_element_type=jnp.float32)
    sim_ref[...] = sim                                            # (B, B)

    rid = jax.lax.broadcasted_iota(jnp.int32, (B, B), 0)
    cid = jax.lax.broadcasted_iota(jnp.int32, (B, B), 1)
    diag = jnp.sum(jnp.where(rid == cid, sim, 0.0), axis=-1, keepdims=True)
    smax = jnp.max(sim, axis=-1, keepdims=True)
    lse_s = smax + jnp.log(jnp.sum(jnp.exp(sim - smax), axis=-1, keepdims=True))
    sim_loss = (2.0 / B) * jnp.sum(lse_s - diag, keepdims=True)   # (1, 1)

    # single combined (1,1) write: CE(sim) + CE(sim.T) + mlm loss
    loss_ref[...] = sim_loss + lm_loss


# =============================================================================
# Full forward (wrapper: only cheap index plumbing outside the kernel)
# =============================================================================
def simcse_mlm_forward(params, input_ids, attention_mask, mlm_input_ids, mlm_labels):
    # TODO(synk): attention_mask is accepted but unused — the synthetic
    # stand-in has no attention / padding masking (CLS pooling uses token 0).
    del attention_mask
    E, W_enc, b_enc, W_mlm, b_mlm = params

    # Stack both passes into one row slab so the kernel runs a single encoder
    # matmul; CLS tokens go first so pooling is a static leading slice.
    ids_stacked = jnp.concatenate(
        [input_ids[:, 0].reshape(-1),            # B CLS tokens (encoder pass)
         input_ids[:, 1:].reshape(-1),           # remaining encoder tokens
         mlm_input_ids.reshape(-1)],             # masked (MLM) pass
        axis=0).astype(jnp.int32).reshape(2 * B * S, 1)
    labels = mlm_labels.reshape(B * S, 1).astype(jnp.int32)

    loss, pooled, logits, sim = pl.pallas_call(
        _fused_kernel,
        out_shape=(
            jax.ShapeDtypeStruct((1, 1), jnp.float32),        # total loss
            jax.ShapeDtypeStruct((B, H), jnp.float32),        # pooled CLS
            jax.ShapeDtypeStruct((B * S, V), jnp.float32),    # MLM logits
            jax.ShapeDtypeStruct((B, B), jnp.float32),        # similarity
        ),
        in_specs=[
            pl.BlockSpec(ids_stacked.shape, lambda: (0, 0)),
            pl.BlockSpec(labels.shape, lambda: (0, 0)),
            pl.BlockSpec(E.shape, lambda: (0, 0)),
            pl.BlockSpec(W_enc.shape, lambda: (0, 0)),
            pl.BlockSpec(b_enc.shape, lambda: (0, 0)),
            pl.BlockSpec(W_mlm.shape, lambda: (0, 0)),
            pl.BlockSpec(b_mlm.shape, lambda: (0, 0)),
        ],
        out_specs=(
            pl.BlockSpec((1, 1), lambda: (0, 0)),
            pl.BlockSpec((B, H), lambda: (0, 0)),
            pl.BlockSpec((B * S, V), lambda: (0, 0)),
            pl.BlockSpec((B, B), lambda: (0, 0)),
        ),
    )(ids_stacked, labels, E, W_enc, b_enc, W_mlm, b_mlm)

    return dict(loss=loss[0, 0],
                pooled_output=pooled,
                logits=logits.reshape(B, S, V),
                similarity=sim)


if __name__ == "__main__":
    key = jax.random.PRNGKey(0)
    k_emb, k_w1, k_w2, k_ids, k_mask = jax.random.split(key, 5)

    # deterministic synthetic parameters
    E = jax.random.normal(k_emb, (V, H), jnp.float32) * 0.02
    W_enc = jax.random.normal(k_w1, (H, H), jnp.float32) * 0.05
    b_enc = jnp.zeros((1, H), jnp.float32)
    W_mlm = jax.random.normal(k_w2, (H, V), jnp.float32) * 0.05
    b_mlm = jnp.zeros((1, V), jnp.float32)
    params = (E, W_enc, b_enc, W_mlm, b_mlm)

    # deterministic synthetic inputs
    input_ids = jax.random.randint(k_ids, (B, S), 5, V)       # avoid special ids
    attention_mask = jnp.ones((B, S), jnp.int32)

    # apply_masking equivalent (deterministic): mask ~20% of non-special
    # positions.
    # TODO(synk): HF apply_masking's 80/10/10 mask/random/keep split is not
    # reproduced in this stand-in.
    mask_prob = jax.random.uniform(k_mask, (B, S))
    special = jnp.zeros((B, S), bool).at[:, 0].set(True)       # pos 0 = [CLS]
    masked = (mask_prob < MLM_PROB) & (~special)
    mlm_input_ids = jnp.where(masked, MASK_TOKEN_ID, input_ids)
    mlm_labels = jnp.where(masked, input_ids, IGNORE_INDEX)

    out = simcse_mlm_forward(params, input_ids, attention_mask,
                             mlm_input_ids, mlm_labels)
    jax.block_until_ready(out["loss"])
    assert out["pooled_output"].shape == (B, H)
    assert out["logits"].shape == (B, S, V)
    assert out["similarity"].shape == (B, B)
    assert jnp.isfinite(out["loss"])
    print("KERNEL_OK")
</pallas_src>

<mosaic_0001>
module attributes {stable_mosaic.version = 11 : i64} {
  func.func @_fused_kernel(%arg0: memref<64x1xi32, #tpu.memory_space<vmem>>, %arg1: memref<32x1xi32, #tpu.memory_space<vmem>>, %arg2: memref<256x128xf32, #tpu.memory_space<vmem>>, %arg3: memref<128x128xf32, #tpu.memory_space<vmem>>, %arg4: memref<1x128xf32, #tpu.memory_space<vmem>>, %arg5: memref<128x256xf32, #tpu.memory_space<vmem>>, %arg6: memref<1x256xf32, #tpu.memory_space<vmem>>, %arg7: memref<1x1xf32, #tpu.memory_space<vmem>>, %arg8: memref<4x128xf32, #tpu.memory_space<vmem>>, %arg9: memref<32x256xf32, #tpu.memory_space<vmem>>, %arg10: memref<4x4xf32, #tpu.memory_space<vmem>>) attributes {dimension_semantics = [], scalar_prefetch = 0 : i64, scratch_operands = 0 : i64, tpu.core_type = #tpu.core_type<tc>} {
    %c0 = arith.constant 0 : index
    %c0_0 = arith.constant 0 : index
    %0 = vector.load %arg0[%c0, %c0_0] : memref<64x1xi32, #tpu.memory_space<vmem>>, vector<64x1xi32>
    %1 = tpu.iota {dimensions = array<i32: 1>} : vector<64x256xi32>
    %2 = vector.broadcast %0 : vector<64x1xi32> to vector<64x256xi32>
    %3 = arith.cmpi eq, %1, %2 : vector<64x256xi32>
    %4 = arith.extui %3 : vector<64x256xi1> to vector<64x256xi32>
    %5 = arith.sitofp %4 : vector<64x256xi32> to vector<64x256xf32>
    %6 = arith.truncf %5 : vector<64x256xf32> to vector<64x256xbf16>
    %c0_1 = arith.constant 0 : index
    %c0_2 = arith.constant 0 : index
    %7 = vector.load %arg2[%c0_1, %c0_2] : memref<256x128xf32, #tpu.memory_space<vmem>>, vector<256x128xf32>
    %8 = arith.truncf %7 : vector<256x128xf32> to vector<256x128xbf16>
    %cst = arith.constant dense<0.000000e+00> : vector<64x128xf32>
    %9 = tpu.matmul %6, %8, %cst {dimension_numbers = #tpu.dot_dimension_numbers<[1], [0], [0], [1], [0, 0, 1, 1], [], []>} : vector<64x256xbf16>, vector<256x128xbf16>, vector<64x128xf32> -> vector<64x128xf32>
    %10 = arith.truncf %9 : vector<64x128xf32> to vector<64x128xbf16>
    %c0_3 = arith.constant 0 : index
    %c0_4 = arith.constant 0 : index
    %11 = vector.load %arg3[%c0_3, %c0_4] : memref<128x128xf32, #tpu.memory_space<vmem>>, vector<128x128xf32>
    %12 = arith.truncf %11 : vector<128x128xf32> to vector<128x128xbf16>
    %cst_5 = arith.constant dense<0.000000e+00> : vector<64x128xf32>
    %13 = tpu.matmul %10, %12, %cst_5 {dimension_numbers = #tpu.dot_dimension_numbers<[1], [0], [0], [1], [0, 0, 1, 1], [], []>} : vector<64x128xbf16>, vector<128x128xbf16>, vector<64x128xf32> -> vector<64x128xf32>
    %c0_6 = arith.constant 0 : index
    %c0_7 = arith.constant 0 : index
    %14 = vector.load %arg4[%c0_6, %c0_7] : memref<1x128xf32, #tpu.memory_space<vmem>>, vector<1x128xf32>
    %15 = vector.broadcast %14 : vector<1x128xf32> to vector<64x128xf32>
    %16 = arith.addf %13, %15 : vector<64x128xf32>
    %17 = math.tanh %16 : vector<64x128xf32>
    %18 = vector.extract_strided_slice %17 {offsets = [0, 0], sizes = [4, 128], strides = [1, 1]} : vector<64x128xf32> to vector<4x128xf32>
    %c0_8 = arith.constant 0 : index
    %c0_9 = arith.constant 0 : index
    %19 = vector.load %arg8[%c0_8, %c0_9] : memref<4x128xf32, #tpu.memory_space<vmem>>, vector<4x128xf32>
    tpu.vector_store %arg8[%c0_8, %c0_9], %18 {strides = array<i32>} : memref<4x128xf32, #tpu.memory_space<vmem>>, vector<4x128xf32>,
    %20 = vector.extract_strided_slice %17 {offsets = [32, 0], sizes = [32, 128], strides = [1, 1]} : vector<64x128xf32> to vector<32x128xf32>
    %21 = arith.truncf %20 : vector<32x128xf32> to vector<32x128xbf16>
    %c0_10 = arith.constant 0 : index
    %c0_11 = arith.constant 0 : index
    %22 = vector.load %arg5[%c0_10, %c0_11] : memref<128x256xf32, #tpu.memory_space<vmem>>, vector<128x256xf32>
    %23 = arith.truncf %22 : vector<128x256xf32> to vector<128x256xbf16>
    %cst_12 = arith.constant dense<0.000000e+00> : vector<32x256xf32>
    %24 = tpu.matmul %21, %23, %cst_12 {dimension_numbers = #tpu.dot_dimension_numbers<[1], [0], [0], [1], [0, 0, 1, 1], [], []>} : vector<32x128xbf16>, vector<128x256xbf16>, vector<32x256xf32> -> vector<32x256xf32>
    %c0_13 = arith.constant 0 : index
    %c0_14 = arith.constant 0 : index
    %25 = vector.load %arg6[%c0_13, %c0_14] : memref<1x256xf32, #tpu.memory_space<vmem>>, vector<1x256xf32>
    %26 = vector.broadcast %25 : vector<1x256xf32> to vector<32x256xf32>
    %27 = arith.addf %24, %26 : vector<32x256xf32>
    %c0_15 = arith.constant 0 : index
    %c0_16 = arith.constant 0 : index
    %28 = vector.load %arg9[%c0_15, %c0_16] : memref<32x256xf32, #tpu.memory_space<vmem>>, vector<32x256xf32>
    tpu.vector_store %arg9[%c0_15, %c0_16], %27 {strides = array<i32>} : memref<32x256xf32, #tpu.memory_space<vmem>>, vector<32x256xf32>,
    %c0_17 = arith.constant 0 : index
    %c0_18 = arith.constant 0 : index
    %29 = vector.load %arg1[%c0_17, %c0_18] : memref<32x1xi32, #tpu.memory_space<vmem>>, vector<32x1xi32>
    %cst_19 = arith.constant dense<0xFF800000> : vector<32xf32>
    %30 = vector.multi_reduction <maximumf>, %27, %cst_19 [1] : vector<32x256xf32> to vector<32xf32>
    %31 = vector.shape_cast %30 : vector<32xf32> to vector<32x1xf32>
    %32 = vector.broadcast %31 : vector<32x1xf32> to vector<32x256xf32>
    %33 = arith.subf %27, %32 : vector<32x256xf32>
    %34 = math.exp %33 : vector<32x256xf32>
    %cst_20 = arith.constant dense<0.000000e+00> : vector<32xf32>
    %35 = vector.multi_reduction <add>, %34, %cst_20 [1] : vector<32x256xf32> to vector<32xf32>
    %36 = vector.shape_cast %35 : vector<32xf32> to vector<32x1xf32>
    %37 = math.log %36 : vector<32x1xf32>
    %38 = arith.addf %31, %37 : vector<32x1xf32>
    %39 = tpu.iota {dimensions = array<i32: 1>} : vector<32x256xi32>
    %40 = vector.broadcast %29 : vector<32x1xi32> to vector<32x256xi32>
    %41 = arith.cmpi eq, %39, %40 : vector<32x256xi32>
    %cst_21 = arith.constant 0.000000e+00 : f32
    %42 = vector.broadcast %cst_21 : f32 to vector<32x256xf32>
    %43 = arith.select %41, %27, %42 : vector<32x256xi1>, vector<32x256xf32>
    %cst_22 = arith.constant dense<0.000000e+00> : vector<32xf32>
    %44 = vector.multi_reduction <add>, %43, %cst_22 [1] : vector<32x256xf32> to vector<32xf32>
    %45 = vector.shape_cast %44 : vector<32xf32> to vector<32x1xf32>
    %c-100_i32 = arith.constant -100 : i32
    %46 = vector.broadcast %c-100_i32 : i32 to vector<32x1xi32>
    %47 = arith.cmpi ne, %29, %46 : vector<32x1xi32>
    %48 = arith.extui %47 : vector<32x1xi1> to vector<32x1xi32>
    %49 = arith.sitofp %48 : vector<32x1xi32> to vector<32x1xf32>
    %50 = arith.subf %38, %45 : vector<32x1xf32>
    %51 = arith.mulf %50, %49 : vector<32x1xf32>
    %52 = vector.shape_cast %51 : vector<32x1xf32> to vector<1x32x1xf32>
    %cst_23 = arith.constant dense<0.000000e+00> : vector<1xf32>
    %53 = vector.multi_reduction <add>, %52, %cst_23 [1, 2] : vector<1x32x1xf32> to vector<1xf32>
    %54 = vector.shape_cast %53 : vector<1xf32> to vector<1x1x1xf32>
    %55 = vector.extract %54[0, 0, 0] : f32 from vector<1x1x1xf32>
    %56 = vector.broadcast %55 : f32 to vector<1x1xf32>
    %57 = vector.shape_cast %49 : vector<32x1xf32> to vector<1x32x1xf32>
    %cst_24 = arith.constant dense<0.000000e+00> : vector<1xf32>
    %58 = vector.multi_reduction <add>, %57, %cst_24 [1, 2] : vector<1x32x1xf32> to vector<1xf32>
    %59 = vector.shape_cast %58 : vector<1xf32> to vector<1x1x1xf32>
    %60 = vector.extract %59[0, 0, 0] : f32 from vector<1x1x1xf32>
    %61 = vector.broadcast %60 : f32 to vector<1x1xf32>
    %cst_25 = arith.constant 1.000000e+00 : f32
    %62 = vector.broadcast %cst_25 : f32 to vector<1x1xf32>
    %63 = arith.maximumf %61, %62 : vector<1x1xf32>
    %64 = arith.divf %56, %63 : vector<1x1xf32>
    %65 = arith.mulf %18, %18 : vector<4x128xf32>
    %cst_26 = arith.constant dense<0.000000e+00> : vector<4xf32>
    %66 = vector.multi_reduction <add>, %65, %cst_26 [1] : vector<4x128xf32> to vector<4xf32>
    %67 = vector.shape_cast %66 : vector<4xf32> to vector<4x1xf32>
    %cst_27 = arith.constant 1.000000e-24 : f32
    %68 = vector.broadcast %cst_27 : f32 to vector<4x1xf32>
    %69 = arith.maximumf %67, %68 : vector<4x1xf32>
    %70 = math.rsqrt %69 : vector<4x1xf32>
    %71 = vector.broadcast %70 : vector<4x1xf32> to vector<4x128xf32>
    %72 = arith.mulf %18, %71 : vector<4x128xf32>
    %73 = tpu.transpose %72, [1, 0] : vector<4x128xf32> -> vector<128x4xf32>
    %cst_28 = arith.constant dense<0.000000e+00> : vector<4x4xf32>
    %74 = tpu.matmul %72, %73, %cst_28 {dimension_numbers = #tpu.dot_dimension_numbers<[1], [0], [0], [1], [0, 0, 1, 1], [], []>} : vector<4x128xf32>, vector<128x4xf32>, vector<4x4xf32> -> vector<4x4xf32>
    %cst_29 = arith.constant 2.000000e+01 : f32
    %75 = vector.broadcast %cst_29 : f32 to vector<4x4xf32>
    %76 = arith.mulf %75, %74 : vector<4x4xf32>
    %c0_30 = arith.constant 0 : index
    %c0_31 = arith.constant 0 : index
    %77 = vector.load %arg10[%c0_30, %c0_31] : memref<4x4xf32, #tpu.memory_space<vmem>>, vector<4x4xf32>
    tpu.vector_store %arg10[%c0_30, %c0_31], %76 {strides = array<i32>} : memref<4x4xf32, #tpu.memory_space<vmem>>, vector<4x4xf32>,
    %78 = tpu.iota {dimensions = array<i32: 0>} : vector<4x4xi32>
    %79 = tpu.iota {dimensions = array<i32: 1>} : vector<4x4xi32>
    %80 = arith.cmpi eq, %78, %79 : vector<4x4xi32>
    %cst_32 = arith.constant 0.000000e+00 : f32
    %81 = vector.broadcast %cst_32 : f32 to vector<4x4xf32>
    %82 = arith.select %80, %76, %81 : vector<4x4xi1>, vector<4x4xf32>
    %cst_33 = arith.constant dense<0.000000e+00> : vector<4xf32>
    %83 = vector.multi_reduction <add>, %82, %cst_33 [1] : vector<4x4xf32> to vector<4xf32>
    %84 = vector.shape_cast %83 : vector<4xf32> to vector<4x1xf32>
    %cst_34 = arith.constant dense<0xFF800000> : vector<4xf32>
    %85 = vector.multi_reduction <maximumf>, %76, %cst_34 [1] : vector<4x4xf32> to vector<4xf32>
    %86 = vector.shape_cast %85 : vector<4xf32> to vector<4x1xf32>
    %87 = vector.broadcast %86 : vector<4x1xf32> to vector<4x4xf32>
    %88 = arith.subf %76, %87 : vector<4x4xf32>
    %89 = math.exp %88 : vector<4x4xf32>
    %cst_35 = arith.constant dense<0.000000e+00> : vector<4xf32>
    %90 = vector.multi_reduction <add>, %89, %cst_35 [1] : vector<4x4xf32> to vector<4xf32>
    %91 = vector.shape_cast %90 : vector<4xf32> to vector<4x1xf32>
    %92 = math.log %91 : vector<4x1xf32>
    %93 = arith.addf %86, %92 : vector<4x1xf32>
    %94 = arith.subf %93, %84 : vector<4x1xf32>
    %95 = vector.shape_cast %94 : vector<4x1xf32> to vector<1x4x1xf32>
    %cst_36 = arith.constant dense<0.000000e+00> : vector<1xf32>
    %96 = vector.multi_reduction <add>, %95, %cst_36 [1, 2] : vector<1x4x1xf32> to vector<1xf32>
    %97 = vector.shape_cast %96 : vector<1xf32> to vector<1x1x1xf32>
    %98 = vector.extract %97[0, 0, 0] : f32 from vector<1x1x1xf32>
    %99 = vector.broadcast %98 : f32 to vector<1x1xf32>
    %cst_37 = arith.constant 5.000000e-01 : f32
    %100 = vector.broadcast %cst_37 : f32 to vector<1x1xf32>
    %101 = arith.mulf %100, %99 : vector<1x1xf32>
    %102 = arith.addf %101, %64 : vector<1x1xf32>
    %c0_38 = arith.constant 0 : index
    %c0_39 = arith.constant 0 : index
    %103 = vector.load %arg7[%c0_38, %c0_39] : memref<1x1xf32, #tpu.memory_space<vmem>>, vector<1x1xf32>
    tpu.vector_store %arg7[%c0_38, %c0_39], %102 {strides = array<i32>} : memref<1x1xf32, #tpu.memory_space<vmem>>, vector<1x1xf32>,
    return
  }
}

</mosaic_0001>

<bundles_post_ra>
// kernel: tpu_custom_call.1
= control target key start
LH: loop header
LB: loop body
LE: loop exit
PB: predicated region body
PF: predicated region fallthrough
CT: control target
= control target key end

     0   :  { %16 = vsyncpa [#allocation3], 0  ;;  %s1330_s0 = inlined_call_operand.vmem [shape: s32[64,1], index: 0, kind: input, shape index: {}]   ;;  %s1331_s1 = inlined_call_operand.vmem [shape: s32[32,1], index: 1, kind: input, shape index: {}]   ;;  %s1332_s2 = inlined_call_operand.hbm [shape: f32[256,128], index: 2, kind: input, shape index: {}]   ;;  %s1333_s3 = inlined_call_operand.hbm [shape: f32[128,128], index: 3, kind: input, shape index: {}]   ;;  %s1334_s4 = inlined_call_operand.vmem [shape: f32[1,128], index: 4, kind: input, shape index: {}]   ;;  %s1335_s5 = inlined_call_operand.hbm [shape: f32[128,256], index: 5, kind: input, shape index: {}]   ;;  %s1336_s6 = inlined_call_operand.vmem [shape: f32[1,256], index: 6, kind: input, shape index: {}]   ;;  %s1337_s7 = inlined_call_operand.hbm [shape: f32[1,1], index: 7, kind: output, shape index: {0}]   ;;  %s1338_s8 = inlined_call_operand.hbm [shape: f32[4,128], index: 8, kind: output, shape index: {1}]   ;;  %s1339_s9 = inlined_call_operand.hbm [shape: f32[32,256], index: 9, kind: output, shape index: {2}]   ;;  %s1340_s10 = inlined_call_operand.hbm [shape: f32[4,4], index: 10, kind: output, shape index: {3}]  }
   0x1   :  { %17 = vsyncpa [#allocation6], 0 }
   0x2   :  { %18 = vsyncpa [#allocation4], 0 }
   0x3   :  { %19 = vsyncpa [#allocation10], 0 }
   0x4   :  { %20 = vsyncpa [#allocation13], 0  ;;  %s42_s15 = sshll.u32 %s1333_s3, 4  ;;  %s1041_s16 = smov [#allocation5]   ;;  %s43_s15 = int_to_ptr.hbm [resolvable:$true] %s42_s15 }
   0x5   :  { %s44_s17 = sshll.u32 %s1041_s16, 4  ;;  %s29_s20 = sshll.u32 %s1332_s2, 4  ;;  %s45_s17 = int_to_ptr.vmem [resolvable:$true] %s44_s17  ;;  %s30_s20 = int_to_ptr.hbm [resolvable:$true] %s29_s20 }
   0x6   :  { %s1042_s21 = smov 128   ;;  %s1043_s22 = smov 8  }
   0x7   :  { %50 = dma.hbm_to_vmem [thread:$0]  %s43_s15, 2048, %s45_s17, [#allocation6], %s1042_s21, %s1042_s21, %s1043_s22  }
   0x8   :  { %s1044_s23 = smov [#allocation2]   ;;  %s57_s27 = sshll.u32 %s1335_s5, 4  ;;  %s58_s27 = int_to_ptr.hbm [resolvable:$true] %s57_s27 }
   0x9   :  { %s31_s24 = sshll.u32 %s1044_s23, 4  ;;  %s1045_s3 = smov [#allocation7]   ;;  %s32_s24 = int_to_ptr.vmem [resolvable:$true] %s31_s24 }
   0xa   :  { %37 = dma.hbm_to_vmem [thread:$0]  %s30_s20, 4096, %s32_s24, [#allocation3], %s1042_s21, %s1042_s21, %s1043_s22  }
   0xb   :  { %s59_s28 = sshll.u32 %s1045_s3, 4  ;;  %s1046_s29 = smov 256   ;;  %s60_s28 = int_to_ptr.vmem [resolvable:$true] %s59_s28 }
   0xc   :  { %s1047_s30 = smov 16  }
   0xd   :  { %65 = dma.hbm_to_vmem [thread:$0]  %s58_s27, 4096, %s60_s28, [#allocation6], %s1046_s29, %s1046_s29, %s1047_s30  }
   0xe   :  { %1031 = dma.done.wait [#allocation3], 4096  }
   0xf   :  { %1032 = vsyncadd [#allocation3], 4294963200 }
  0x10   :  { %1033 = dma.done.wait [#allocation6], 6144  }
  0x11   :  { %1034 = vsyncadd [#allocation6], 4294961152  ;;  %v1048_v0 = vmov 0   ;;  %v82_v1 = vld [vmem:[%s1330_s0 + $0x10] sm:$0xff]  ;;  %v80_v2 = vld [vmem:[%s1330_s0] sm:$0xff]  ;;  %v88_v58 = vlaneseq  ;;  %s712_s14 = sshll.u32 %s1338_s8, 4  ;;  %s713_s14 = int_to_ptr.hbm [resolvable:$true] %s712_s14 }
  0x12   :  { %818 = vset.pattern.permute.xlu1 %v1048_v0  ;;  %817 = vset.pattern.permute.xlu0 %v1048_v0  ;;  %v84_v3 = vld [vmem:[%s1330_s0 + $0x20] sm:$0xff]  ;;  %v185_v4 = vld [vmem:[#allocation2 + $0x70] sm:$0xff]  ;;  %v186_v5 = vld [vmem:[#allocation2 + $0x78] sm:$0xff]  ;;  %v1049_v63 = vmov 1.0|1.0   ;;  %s1051_s15 = smov [#allocation9]  }
  0x13   :  { %819 = vset.pattern.permute.xlu2 %v1048_v0  ;;  %98 = vperm.xlu1 %818, %v82_v1   ;;  %v201_v6 = vld [vmem:[#allocation2 + $0xf0] sm:$0xff]  ;;  %v210_v7 = vpack.c.bf16 %v186_v5, %v185_v4  ;;  %v202_v8 = vld [vmem:[#allocation2 + $0xf8] sm:$0xff]  ;;  %v183_v9 = vld [vmem:[#allocation2 + $0x60] sm:$0xff]  ;;  %v1153_v60 = vand.u32 127, %v88_v58  ;;  %s710_s16 = sshll.u32 %s1051_s15, 4  ;;  %s722_s19 = sshll.u32 %s1339_s9, 4  ;;  %s711_s16 = int_to_ptr.vmem [resolvable:$true] %s710_s16  ;;  %s723_s19 = int_to_ptr.hbm [resolvable:$true] %s722_s19 }
  0x14   :  { %92 = vperm.xlu0 %817, %v80_v2   ;;  %104 = vperm.xlu2 %819, %v84_v3   ;;  %v184_v10 = vld [vmem:[#allocation2 + $0x68] sm:$0xff]  ;;  %v218_v11 = vpack.c.bf16 %v202_v8, %v201_v6  ;;  %v199_v12 = vld [vmem:[#allocation2 + $0xe0] sm:$0xff]  ;;  %v83_v14 = vld [vmem:[%s1330_s0 + $0x18] sm:$0xff]  ;;  %s1052_s20 = smov [#allocation11]   ;;  %s1053_s8 = smov [#allocation12]  }
  0x15   :  { %v200_v13 = vld [vmem:[#allocation2 + $0xe8] sm:$0xff]  ;;  %219 = vmatpush.bf16.msra.mxu0 %v210_v7  ;;  %v209_v16 = vpack.c.bf16 %v184_v10, %v183_v9  ;;  %v181_v18 = vld [vmem:[#allocation2 + $0x50] sm:$0xff]  ;;  %v182_v19 = vld [vmem:[#allocation2 + $0x58] sm:$0xff]  ;;  %v1156_v61 = vadd.s32 128, %v1153_v60  ;;  %s720_s21 = sshll.u32 %s1052_s20, 4  ;;  %s734_s22 = sshll.u32 %s1053_s8, 4  ;;  %s721_s21 = int_to_ptr.vmem [resolvable:$true] %s720_s21  ;;  %s735_s22 = int_to_ptr.vmem [resolvable:$true] %s734_s22 }
  0x16   :  { %v81_v15 = vld [vmem:[%s1330_s0 + $0x8] sm:$0xff]  ;;  %248 = vmatpush.bf16.msra.mxu1 %v218_v11  ;;  %v217_v17 = vpack.c.bf16 %v200_v13, %v199_v12  ;;  %v197_v21 = vld [vmem:[#allocation2 + $0xd0] sm:$0xff]  ;;  %v198_v22 = vld [vmem:[#allocation2 + $0xd8] sm:$0xff]  ;;  %v208_v23 = vpack.c.bf16 %v182_v19, %v181_v18  ;;  %s736_s25 = sshll.u32 %s1340_s10, 4  ;;  %s737_s25 = int_to_ptr.hbm [resolvable:$true] %s736_s25 }
  0x17   :  { %v85_v20 = vld [vmem:[%s1330_s0 + $0x28] sm:$0xff]  ;;  %v216_v24 = vpack.c.bf16 %v198_v22, %v197_v21  ;;  %v179_v25 = vld [vmem:[#allocation2 + $0x40] sm:$0xff]  ;;  %v87_v29 = vld [vmem:[%s1330_s0 + $0x38] sm:$0xff] }
  0x18   :  { %v180_v26 = vld [vmem:[#allocation2 + $0x48] sm:$0xff]  ;;  %v195_v27 = vld [vmem:[#allocation2 + $0xc0] sm:$0xff]  ;;  %v86_v30 = vld [vmem:[%s1330_s0 + $0x30] sm:$0xff] }
  0x19   :  { %220 = vmatpush.bf16.msra.mxu0 %v209_v16  ;;  %v196_v28 = vld [vmem:[#allocation2 + $0xc8] sm:$0xff]  ;;  %v207_v31 = vpack.c.bf16 %v180_v26, %v179_v25  ;;  %v177_v33 = vld [vmem:[#allocation2 + $0x30] sm:$0xff]  ;;  %v178_v34 = vld [vmem:[#allocation2 + $0x38] sm:$0xff] }
  0x1a   :  { %249 = vmatpush.bf16.msra.mxu1 %v217_v17  ;;  %v215_v32 = vpack.c.bf16 %v196_v28, %v195_v27  ;;  %v193_v35 = vld [vmem:[#allocation2 + $0xb0] sm:$0xff]  ;;  %v194_v36 = vld [vmem:[#allocation2 + $0xb8] sm:$0xff]  ;;  %v206_v37 = vpack.c.bf16 %v178_v34, %v177_v33  ;;  %v175_v39 = vld [vmem:[#allocation2 + $0x20] sm:$0xff] }
  0x1b   :  { %101 = vperm.xlu1 %818, %v83_v14   ;;  %v214_v38 = vpack.c.bf16 %v194_v36, %v193_v35  ;;  %v176_v40 = vld [vmem:[#allocation2 + $0x28] sm:$0xff]  ;;  %v191_v41 = vld [vmem:[#allocation2 + $0xa0] sm:$0xff]  ;;  %v173_v46 = vld [vmem:[#allocation2 + $0x10] sm:$0xff] }
  0x1c   :  { %95 = vperm.xlu0 %817, %v81_v15   ;;  %107 = vperm.xlu2 %819, %v85_v20   ;;  %v192_v42 = vld [vmem:[#allocation2 + $0xa8] sm:$0xff]  ;;  %v1149_v43 = vld [vmem:[%s1331_s1] sm:$0xff]  ;;  %v205_v44 = vpack.c.bf16 %v176_v40, %v175_v39  ;;  %v174_v47 = vld [vmem:[#allocation2 + $0x18] sm:$0xff] }
  0x1d   :  { %221 = vmatpush.bf16.msra.mxu0 %v208_v23  ;;  %v213_v45 = vpack.c.bf16 %v192_v42, %v191_v41  ;;  %v189_v48 = vld [vmem:[#allocation2 + $0x90] sm:$0xff]  ;;  %v204_v49 = vpack.c.bf16 %v174_v47, %v173_v46  ;;  %v190_v50 = vld [vmem:[#allocation2 + $0x98] sm:$0xff]  ;;  %v171_v51 = vld [vmem:[#allocation2] sm:$0xff] }
  0x1e   :  { %250 = vmatpush.bf16.msra.mxu1 %v216_v24  ;;  %v172_v52 = vld [vmem:[#allocation2 + $0x8] sm:$0xff]  ;;  %v212_v53 = vpack.c.bf16 %v190_v50, %v189_v48  ;;  %v187_v54 = vld [vmem:[#allocation2 + $0x80] sm:$0xff]  ;;  %v295_v3 = vld [vmem:[#allocation5 + $0x70] sm:$0xff] }
  0x1f   :  { %v188_v55 = vld [vmem:[#allocation2 + $0x88] sm:$0xff]  ;;  %v203_v56 = vpack.c.bf16 %v172_v52, %v171_v51  ;;  %v296_v4 = vld [vmem:[#allocation5 + $0x78] sm:$0xff]  ;;  %v293_v5 = vld [vmem:[#allocation5 + $0x60] sm:$0xff] }
  0x20   :  { %v211_v57 = vpack.c.bf16 %v188_v55, %v187_v54  ;;  %v304_v6 = vpack.c.bf16 %v296_v4, %v295_v3  ;;  %v294_v7 = vld [vmem:[#allocation5 + $0x68] sm:$0xff]  ;;  %v291_v9 = vld [vmem:[#allocation5 + $0x50] sm:$0xff]  ;;  %v292_v10 = vld [vmem:[#allocation5 + $0x58] sm:$0xff] }
  0x21   :  { %222 = vmatpush.bf16.msra.mxu0 %v207_v31  ;;  %v303_v8 = vpack.c.bf16 %v294_v7, %v293_v5  ;;  %v302_v11 = vpack.c.bf16 %v292_v10, %v291_v9  ;;  %v289_v13 = vld [vmem:[#allocation5 + $0x40] sm:$0xff]  ;;  %v290_v14 = vld [vmem:[#allocation5 + $0x48] sm:$0xff]  ;;  %v287_v16 = vld [vmem:[#allocation5 + $0x30] sm:$0xff] }
  0x22   :  { %251 = vmatpush.bf16.msra.mxu1 %v215_v32  ;;  %309 = vmatpush.bf16.msra.mxu2 %v304_v6  ;;  %v301_v15 = vpack.c.bf16 %v290_v14, %v289_v13  ;;  %v288_v17 = vld [vmem:[#allocation5 + $0x38] sm:$0xff]  ;;  %v285_v21 = vld [vmem:[#allocation5 + $0x20] sm:$0xff]  ;;  %v286_v22 = vld [vmem:[#allocation5 + $0x28] sm:$0xff] }
  0x23   :  { %113 = vperm.xlu1 %818, %v87_v29   ;;  %v300_v18 = vpack.c.bf16 %v288_v17, %v287_v16  ;;  %v299_v23 = vpack.c.bf16 %v286_v22, %v285_v21  ;;  %v283_v24 = vld [vmem:[#allocation5 + $0x10] sm:$0xff]  ;;  %v284_v25 = vld [vmem:[#allocation5 + $0x18] sm:$0xff]  ;;  %v281_v27 = vld [vmem:[#allocation5] sm:$0xff] }
  0x24   :  { %110 = vperm.xlu0 %817, %v86_v30   ;;  %v298_v26 = vpack.c.bf16 %v284_v25, %v283_v24  ;;  %v282_v28 = vld [vmem:[#allocation5 + $0x8] sm:$0xff]  ;;  %v363_v4 = vld [vmem:[#allocation7 + $0xa0] sm:$0xff]  ;;  %v365_v5 = vld [vmem:[#allocation7 + $0xb0] sm:$0xff] }
  0x25   :  { %223 = vmatpush.bf16.msra.mxu0 %v206_v37  ;;  %v297_v29 = vpack.c.bf16 %v282_v28, %v281_v27  ;;  %v385_v6 = vpack.c.bf16 %v365_v5, %v363_v4  ;;  %v1177_v7 = vld [vmem:[%s1334_s4] ss:$0 sm:$0xff]  ;;  %v361_v9 = vld [vmem:[#allocation7 + $0x90] sm:$0xff]  ;;  %s701_s4 = sshll.u32 %s1337_s7, 4  ;;  %s702_s4 = int_to_ptr.hbm [resolvable:$true] %s701_s4 }
  0x26   :  { %252 = vmatpush.bf16.msra.mxu1 %v214_v38  ;;  %310 = vmatpush.bf16.msra.mxu2 %v303_v8  ;;  %v359_v8 = vld [vmem:[#allocation7 + $0x80] sm:$0xff]  ;;  %v357_v14 = vld [vmem:[#allocation7 + $0x70] sm:$0xff] }
  0x27   :  { %v383_v10 = vpack.c.bf16 %v361_v9, %v359_v8  ;;  %v355_v13 = vld [vmem:[#allocation7 + $0x60] sm:$0xff]  ;;  %v353_v17 = vld [vmem:[#allocation7 + $0x50] sm:$0xff] }
  0x28   :  { %v351_v16 = vld [vmem:[#allocation7 + $0x40] sm:$0xff]  ;;  %v345_v27 = vld [vmem:[#allocation7 + $0x10] sm:$0xff] }
  0x29   :  { %224 = vmatpush.bf16.msra.mxu0 %v205_v44  ;;  %v347_v22 = vld [vmem:[#allocation7 + $0x20] sm:$0xff] }
  0x2a   :  { %253 = vmatpush.bf16.msra.mxu1 %v213_v45  ;;  %311 = vmatpush.bf16.msra.mxu2 %v302_v11 }
  0x2c   :  { %508 = vperm.xlu0 %817, %v1149_v43  }
  0x2d   :  { %225 = vmatpush.bf16.msra.mxu0 %v204_v49 }
  0x2e   :  { %254 = vmatpush.bf16.msra.mxu1 %v212_v53  ;;  %312 = vmatpush.bf16.msra.mxu2 %v301_v15  ;;  %v381_v15 = vpack.c.bf16 %v357_v14, %v355_v13 }
  0x31   :  { %226 = vmatpush.bf16.msra.mxu0 %v203_v56 }
  0x32   :  { %255 = vmatpush.bf16.msra.mxu1 %v211_v57  ;;  %313 = vmatpush.bf16.msra.mxu2 %v300_v18  ;;  %v379_v18 = vpack.c.bf16 %v353_v17, %v351_v16 }
  0x36   :  { %314 = vmatpush.bf16.msra.mxu2 %v299_v23  ;;  %v349_v23 = vld [vmem:[#allocation7 + $0x30] sm:$0xff] }
  0x37   :  { %v377_v24 = vpack.c.bf16 %v349_v23, %v347_v22 }
  0x3a   :  { %315 = vmatpush.bf16.msra.mxu2 %v298_v26  ;;  %v343_v26 = vld [vmem:[#allocation7] sm:$0xff] }
  0x3b   :  { %v375_v28 = vpack.c.bf16 %v345_v27, %v343_v26 }
  0x3e   :  { %316 = vmatpush.bf16.msra.mxu2 %v297_v29 }
  0x6e   :  { %v105_v2 = vpop.permute.xlu2 %104 }
  0x6f   :  { %vm123_vm12 = vcmp.eq.s32.totalorder %v1153_v60, %v105_v2  ;;  %vm124_vm14 = vcmp.eq.s32.totalorder %v1156_v61, %v105_v2  ;;  %v369_v2 = vld [vmem:[#allocation7 + $0xd0] sm:$0xff] }
  0x76   :  { %v108_v12 = vpop.permute.xlu2 %107 }
  0x77   :  { %vm125_vm13 = vcmp.eq.s32.totalorder %v1153_v60, %v108_v12  ;;  %vm126_vm15 = vcmp.eq.s32.totalorder %v1156_v61, %v108_v12 }
  0x85   :  { %v99_v0 = vpop.permute.xlu1 %98 }
  0x86   :  { %v93_v59 = vpop.permute.xlu0 %92  ;;  %vm119_vm6 = vcmp.eq.s32.totalorder %v1153_v60, %v99_v0  ;;  %vm120_vm8 = vcmp.eq.s32.totalorder %v1156_v61, %v99_v0 }
  0x87   :  { %vm115_vm0 = vcmp.eq.s32.totalorder %v1153_v60, %v93_v59  ;;  %vm116_vm3 = vcmp.eq.s32.totalorder %v1156_v61, %v93_v59 }
  0x8d   :  { %v102_v1 = vpop.permute.xlu1 %101 }
  0x8e   :  { %v96_v62 = vpop.permute.xlu0 %95  ;;  %vm121_vm7 = vcmp.eq.s32.totalorder %v1153_v60, %v102_v1  ;;  %vm122_vm9 = vcmp.eq.s32.totalorder %v1156_v61, %v102_v1  ;;  %v367_v1 = vld [vmem:[#allocation7 + $0xc0] sm:$0xff] }
  0x8f   :  { %vm117_vm1 = vcmp.eq.s32.totalorder %v1153_v60, %v96_v62  ;;  %vm118_vm2 = vcmp.eq.s32.totalorder %v1156_v61, %v96_v62  ;;  %vm779_vm10 = vmpackc.low %vm121_vm7, %vm119_vm6  ;;  %v371_v62 = vld [vmem:[#allocation7 + $0xe0] sm:$0xff]  ;;  %v387_v3 = vpack.c.bf16 %v369_v2, %v367_v1 }
  0x90   :  { %vm777_vm4 = vmpackc.low %vm117_vm1, %vm115_vm0 }
  0x91   :  { %778 = vmatmul.msk.bf16.vlgmr.msra.gmra.mxu0 %vm777_vm4, %v1049_v63  ;;  %vm785_vm5 = vmpackc.low %vm118_vm2, %vm116_vm3 }
  0x92   :  { %786 = vmatmul.msk.bf16.vlgmr.msra.gmra.mxu1 %vm785_vm5, %v1049_v63  ;;  %vm787_vm11 = vmpackc.low %vm122_vm9, %vm120_vm8  ;;  %vm619_vm8 = vcmask 1043456  }
  0x93   :  { %vm781_vm0 = vmpackc.low %vm125_vm13, %vm123_vm12  ;;  %vm656_vm12 = vcmask 27648  }
  0x94   :  { %vm789_vm1 = vmpackc.low %vm126_vm15, %vm124_vm14 }
  0x95   :  { %v114_v19 = vpop.permute.xlu1 %113 }
  0x96   :  { %v111_v20 = vpop.permute.xlu0 %110  ;;  %vm129_vm2 = vcmp.eq.s32.totalorder %v1153_v60, %v114_v19  ;;  %vm130_vm4 = vcmp.eq.s32.totalorder %v1156_v61, %v114_v19 }
  0x97   :  { %vm127_vm3 = vcmp.eq.s32.totalorder %v1153_v60, %v111_v20  ;;  %vm128_vm5 = vcmp.eq.s32.totalorder %v1156_v61, %v111_v20 }
  0x98   :  { %vm783_vm6 = vmpackc.low %vm129_vm2, %vm127_vm3 }
  0x99   :  { %vm791_vm7 = vmpackc.low %vm130_vm4, %vm128_vm5 }
  0xa1   :  { %780 = vmatmul.msk.bf16.gmra.mxu0 %vm779_vm10, %v1049_v63 }
  0xa2   :  { %788 = vmatmul.msk.bf16.gmra.mxu1 %vm787_vm11, %v1049_v63 }
  0xb1   :  { %782 = vmatmul.msk.bf16.gmra.mxu0 %vm781_vm0, %v1049_v63 }
  0xb2   :  { %790 = vmatmul.msk.bf16.gmra.mxu1 %vm789_vm1, %v1049_v63 }
  0xc1   :  { %784 = vmatmul.msk.bf16.gmra.mxu0 %vm783_vm6, %v1049_v63  ;;  %vm547_vm6 = vcmp.ne.s32.totalorder %v1149_v43, 4294967196 }
  0xc2   :  { %792 = vmatmul.msk.bf16.gmra.mxu1 %vm791_vm7, %v1049_v63  ;;  %v373_v63 = vld [vmem:[#allocation7 + $0xf0] sm:$0xff] }
  0xc3   :  { %v389_v0 = vpack.c.bf16 %v373_v63, %v371_v62 }
  0xc5   :  { %397 = vmatpush.bf16.msra.mxu3 %v389_v0 }
  0xc9   :  { %398 = vmatpush.bf16.msra.mxu3 %v387_v3 }
  0xcd   :  { %399 = vmatpush.bf16.msra.mxu3 %v385_v6 }
  0xd1   :  { %400 = vmatpush.bf16.msra.mxu3 %v383_v10 }
  0xd5   :  { %401 = vmatpush.bf16.msra.mxu3 %v381_v15 }
  0xd9   :  { %402 = vmatpush.bf16.msra.mxu3 %v379_v18 }
  0xdd   :  { %403 = vmatpush.bf16.msra.mxu3 %v377_v24 }
  0xe1   :  { %404 = vmatpush.bf16.msra.mxu3 %v375_v28 }
 0x10e   :  { %v228_v30 = vpop.f32.mrf.mxu0 }
 0x10f   :  { %v257_v31 = vpop.f32.mrf.mxu1 }
 0x110   :  { %v258_v34 = vadd.f32 %v257_v31, %v228_v30  ;;  %v372_v30 = vld [vmem:[#allocation7 + $0xe8] sm:$0xff]  ;;  %v374_v31 = vld [vmem:[#allocation7 + $0xf8] sm:$0xff] }
 0x116   :  { %v230_v32 = vpop.f32.mrf.mxu0 }
 0x117   :  { %v259_v33 = vpop.f32.mrf.mxu1 }
 0x118   :  { %v260_v35 = vadd.f32 %v259_v33, %v230_v32  ;;  %v390_v32 = vpack.c.bf16 %v374_v31, %v372_v30  ;;  %v368_v33 = vld [vmem:[#allocation7 + $0xc8] sm:$0xff] }
 0x11a   :  { %v277_v36 = vpack.c.bf16 %v260_v35, %v258_v34  ;;  %416 = vmatpush.bf16.msrb.mxu3 %v390_v32  ;;  %v370_v34 = vld [vmem:[#allocation7 + $0xd8] sm:$0xff] }
 0x11b   :  { %v388_v35 = vpack.c.bf16 %v370_v34, %v368_v33 }
 0x11c   :  { %317 = vmatmul.bf16.vlgmr.msra.gmra.mxu2 %v277_v36 }
 0x11e   :  { %v233_v37 = vpop.f32.mrf.mxu0  ;;  %417 = vmatpush.bf16.msrb.mxu3 %v388_v35 }
 0x11f   :  { %v262_v38 = vpop.f32.mrf.mxu1 }
 0x120   :  { %v263_v41 = vadd.f32 %v262_v38, %v233_v37  ;;  %v364_v37 = vld [vmem:[#allocation7 + $0xa8] sm:$0xff]  ;;  %v366_v38 = vld [vmem:[#allocation7 + $0xb8] sm:$0xff] }
 0x126   :  { %v235_v39 = vpop.f32.mrf.mxu0 }
 0x127   :  { %v264_v40 = vpop.f32.mrf.mxu1 }
 0x128   :  { %v265_v42 = vadd.f32 %v264_v40, %v235_v39  ;;  %v386_v39 = vpack.c.bf16 %v366_v38, %v364_v37  ;;  %v360_v40 = vld [vmem:[#allocation7 + $0x88] sm:$0xff] }
 0x12a   :  { %v278_v44 = vpack.c.bf16 %v265_v42, %v263_v41  ;;  %v362_v41 = vld [vmem:[#allocation7 + $0x98] sm:$0xff]  ;;  %418 = vmatpush.bf16.msrb.mxu3 %v386_v39 }
 0x12b   :  { %v384_v42 = vpack.c.bf16 %v362_v41, %v360_v40  ;;  %v1223_v39 = vld [vmem:[%s1331_s1 + $0x18] sm:$0xff] }
 0x12c   :  { %321 = vmatmul.bf16.gmra.mxu2 %v278_v44 }
 0x12e   :  { %v238_v45 = vpop.f32.mrf.mxu0  ;;  %419 = vmatpush.bf16.msrb.mxu3 %v384_v42 }
 0x12f   :  { %v267_v46 = vpop.f32.mrf.mxu1 }
 0x130   :  { %v268_v49 = vadd.f32 %v267_v46, %v238_v45  ;;  %v356_v45 = vld [vmem:[#allocation7 + $0x68] sm:$0xff]  ;;  %v358_v46 = vld [vmem:[#allocation7 + $0x78] sm:$0xff] }
 0x136   :  { %v240_v47 = vpop.f32.mrf.mxu0 }
 0x137   :  { %v269_v48 = vpop.f32.mrf.mxu1 }
 0x138   :  { %v270_v50 = vadd.f32 %v269_v48, %v240_v47  ;;  %v382_v47 = vpack.c.bf16 %v358_v46, %v356_v45  ;;  %v352_v48 = vld [vmem:[#allocation7 + $0x48] sm:$0xff]  ;;  %v1240_v45 = vld [vmem:[%s1331_s1 + $0x10] sm:$0xff] }
 0x13a   :  { %v279_v51 = vpack.c.bf16 %v270_v50, %v268_v49  ;;  %v354_v49 = vld [vmem:[#allocation7 + $0x58] sm:$0xff]  ;;  %420 = vmatpush.bf16.msrb.mxu3 %v382_v47 }
 0x13b   :  { %v380_v50 = vpack.c.bf16 %v354_v49, %v352_v48  ;;  %v509_v49 = vpop.permute.xlu0 %508 }
 0x13c   :  { %324 = vmatmul.bf16.gmra.mxu2 %v279_v51  ;;  %vm520_vm13 = vcmp.eq.s32.totalorder %v1156_v61, %v509_v49  ;;  %vm519_vm14 = vcmp.eq.s32.totalorder %v1153_v60, %v509_v49 }
 0x13e   :  { %v243_v52 = vpop.f32.mrf.mxu0  ;;  %421 = vmatpush.bf16.msrb.mxu3 %v380_v50 }
 0x13f   :  { %v272_v53 = vpop.f32.mrf.mxu1 }
 0x140   :  { %v273_v56 = vadd.f32 %v272_v53, %v243_v52  ;;  %v348_v52 = vld [vmem:[#allocation7 + $0x28] sm:$0xff]  ;;  %v350_v53 = vld [vmem:[#allocation7 + $0x38] sm:$0xff] }
 0x146   :  { %v245_v54 = vpop.f32.mrf.mxu0 }
 0x147   :  { %v274_v55 = vpop.f32.mrf.mxu1 }
 0x148   :  { %v275_v57 = vadd.f32 %v274_v55, %v245_v54 }
 0x14a   :  { %v280_v59 = vpack.c.bf16 %v275_v57, %v273_v56  ;;  %v378_v56 = vpack.c.bf16 %v350_v53, %v348_v52  ;;  %v344_v57 = vld [vmem:[#allocation7 + $0x8] sm:$0xff] }
 0x14c   :  { %329 = vmatmul.bf16.gmra.mxu2 %v280_v59  ;;  %v346_v59 = vld [vmem:[#allocation7 + $0x18] sm:$0xff]  ;;  %422 = vmatpush.bf16.msrb.mxu3 %v378_v56 }
 0x14d   :  { %v376_v62 = vpack.c.bf16 %v346_v59, %v344_v57 }
 0x150   :  { %423 = vmatpush.bf16.msrb.mxu3 %v376_v62 }
 0x19f   :  { %v318_v11 = vpop.f32.mrf.mxu2 }
 0x1a0   :  { %v319_v12 = vadd.f32 %v1177_v7, %v318_v11 }
 0x1a2   :  { %821 = vtanh.f32 %v319_v12 }
 0x1a7   :  { %v320_v19 = vpop.f32.mrf.mxu2 }
 0x1a8   :  { %v1180_v20 = vpop.eup %821  ;;  %v391_v19 = vld [vmem:[%s1336_s6] sm:$0x3] }
 0x1a9   :  { %340 = vst [vmem:[#allocation9] sm:$0xf] %v1180_v20  ;;  %v618_v21 = vmul.f32 %v1180_v20, %v1180_v20 }
 0x1aa   :  { %715 = dma.vmem_to_hbm [thread:$0]  %s711_s16, 64, %s713_s14, [#allocation10]  }
 0x1ab   :  { %v620_v25 = vsel %vm619_vm8, %v618_v21, 0.0  ;;  %v393_v21 = vperm.slane %v391_v19, 0  ;;  %vm567_vm8 = vcmask 7168  }
 0x1ac   :  { %621 = vadd.xlane.f32.xlu2 %v620_v25 }
 0x1af   :  { %v322_v29 = vpop.f32.mrf.mxu2 }
 0x1b0   :  { %v394_v29 = vperm.slane %v391_v19, 1 }
 0x1b7   :  { %v323_v36 = vpop.f32.mrf.mxu2 }
 0x1bf   :  { %v325_v44 = vpop.f32.mrf.mxu2 }
 0x1c0   :  { %v326_v51 = vadd.f32 %v1177_v7, %v325_v44  ;;  %v1234_v44 = vld [vmem:[%s1331_s1 + $0x8] sm:$0xff] }
 0x1c1   :  { %vm548_vm7 = vcmp.ne.s32.totalorder %v1234_v44, 4294967196 }
 0x1c2   :  { %823 = vtanh.f32 %v326_v51 }
 0x1c7   :  { %v327_v54 = vpop.f32.mrf.mxu2 }
 0x1c8   :  { %v328_v55 = vadd.f32 %v1177_v7, %v327_v54  ;;  %v824_v63 = vpop.eup %823 }
 0x1ca   :  { %825 = vtanh.f32 %v328_v55 }
 0x1cf   :  { %v330_v0 = vpop.f32.mrf.mxu2 }
 0x1d0   :  { %v826_v1 = vpop.eup %825  ;;  %v331_v3 = vadd.f32 %v1177_v7, %v330_v0 }
 0x1d1   :  { %v341_v2 = vpack.c.bf16 %v826_v1, %v824_v63 }
 0x1d2   :  { %827 = vtanh.f32 %v331_v3 }
 0x1d3   :  { %405 = vmatmul.bf16.vlgmr.msra.gmra.mxu3 %v341_v2 }
 0x1d7   :  { %v332_v4 = vpop.f32.mrf.mxu2 }
 0x1d8   :  { %v333_v5 = vadd.f32 %v1177_v7, %v332_v4  ;;  %v828_v6 = vpop.eup %827 }
 0x1da   :  { %829 = vtanh.f32 %v333_v5 }
 0x1e0   :  { %v830_v8 = vpop.eup %829 }
 0x1e1   :  { %v342_v9 = vpack.c.bf16 %v830_v8, %v828_v6 }
 0x1e3   :  { %410 = vmatmul.bf16.gmra.mxu3 %v342_v9 }
 0x1f3   :  { %424 = vmatmul.bf16.vlgmr.msrb.gmra.mxu3 %v341_v2 }
 0x203   :  { %429 = vmatmul.bf16.gmra.mxu3 %v342_v9 }
 0x21f   :  { %v622_v10 = vpop.xlane.xlu2 %621 }
 0x220   :  { %v623_v11 = vmax.f32 %v622_v10, 1e-24 }
 0x222   :  { %831 = vrsqrt.f32 %v623_v11  ;;  %vm630_vm10 = vweird.f32 %v623_v11 }
 0x228   :  { %v832_v12 = vpop.eup %831 }
 0x229   :  { %v625_v13 = vmul.f32 %v832_v12, %v623_v11  ;;  %vm631_vm9 = vweird.f32 %v832_v12 }
 0x22a   :  { %vm632_vm11 = vmor %vm630_vm10, %vm631_vm9  ;;  %vm549_vm9 = vcmp.ne.s32.totalorder %v1240_v45, 4294967196  ;;  %vm550_vm10 = vcmp.ne.s32.totalorder %v1223_v39, 4294967196 }
 0x22b   :  { %v626_v14 = vmul.f32 %v832_v12, %v625_v13 }
 0x22d   :  { %v627_v15 = vmul.f32 0.5, %v626_v14 }
 0x22f   :  { %v628_v16 = vsub.f32 1.5, %v627_v15 }
 0x231   :  { %v629_v17 = vmul.f32 %v832_v12, %v628_v16 }
 0x233   :  { %v633_v7 = vsel %vm632_vm11, %v832_v12, %v629_v17  ;;  %vm678_vm11 = vcmask 3072  }
 0x234   :  { %v634_v18 = vmul.f32 %v1180_v20, %v633_v7 }
 0x236   :  { %650 = vmatpush.xpose.msrb.mxu0 %v634_v18 }
 0x239   :  { %651 = vmatmul.f32.vlgmr.msrb.gmra.mxu0 %v634_v18 }
 0x256   :  { %v406_v22 = vpop.f32.mrf.mxu3 }
 0x257   :  { %v1193_v23 = vadd.f32 %v406_v22, %v393_v21 }
 0x259   :  { %435 = vst [vmem:[#allocation11] sm:$0xff] %v1193_v23  ;;  %v527_v18 = vsel %vm519_vm14, %v1193_v23, 0.0 }
 0x25e   :  { %v408_v24 = vpop.f32.mrf.mxu3 }
 0x25f   :  { %v1196_v25 = vadd.f32 %v408_v24, %v393_v21 }
 0x261   :  { %437 = vst [vmem:[#allocation11 + $0x10] sm:$0xff] %v1196_v25 }
 0x266   :  { %v411_v26 = vpop.f32.mrf.mxu3 }
 0x267   :  { %v1199_v27 = vadd.f32 %v411_v26, %v393_v21 }
 0x269   :  { %439 = vst [vmem:[#allocation11 + $0x20] sm:$0xff] %v1199_v27 }
 0x26e   :  { %v413_v20 = vpop.f32.mrf.mxu3 }
 0x26f   :  { %v1202_v28 = vadd.f32 %v413_v20, %v393_v21 }
 0x271   :  { %441 = vst [vmem:[#allocation11 + $0x30] sm:$0xff] %v1202_v28 }
 0x276   :  { %v425_v30 = vpop.f32.mrf.mxu3 }
 0x277   :  { %v1205_v31 = vadd.f32 %v425_v30, %v394_v29 }
 0x279   :  { %436 = vst [vmem:[#allocation11 + $0x8] sm:$0xff] %v1205_v31  ;;  %v447_v32 = vmax.f32 %v1193_v23, %v1205_v31  ;;  %v528_v14 = vsel %vm520_vm13, %v1205_v31, 0.0 }
 0x27a   :  { %v535_v22 = vadd.f32 %v528_v14, %v527_v18 }
 0x27b   :  { %448 = vmax.xlane.f32.xlu0 %v447_v32 }
 0x27e   :  { %v427_v33 = vpop.f32.mrf.mxu3 }
 0x27f   :  { %v1210_v34 = vadd.f32 %v427_v33, %v394_v29 }
 0x281   :  { %438 = vst [vmem:[#allocation11 + $0x18] sm:$0xff] %v1210_v34  ;;  %v450_v35 = vmax.f32 %v1196_v25, %v1210_v34 }
 0x283   :  { %451 = vmax.xlane.f32.xlu1 %v450_v35 }
 0x286   :  { %v430_v36 = vpop.f32.mrf.mxu3 }
 0x287   :  { %v1215_v37 = vadd.f32 %v430_v36, %v394_v29 }
 0x289   :  { %440 = vst [vmem:[#allocation11 + $0x28] sm:$0xff] %v1215_v37  ;;  %v453_v38 = vmax.f32 %v1199_v27, %v1215_v37 }
 0x28b   :  { %454 = vmax.xlane.f32.xlu2 %v453_v38  ;;  %v659_v38 = vshrl.u32 %v88_v58, 7  ;;  %v1050_v58 = vmov 0.0  }
 0x28d   :  { %vm660_vm5 = vcmp.eq.s32.totalorder %v659_v38, %v1153_v60 }
 0x28e   :  { %v432_v40 = vpop.f32.mrf.mxu3 }
 0x28f   :  { %v1225_v41 = vadd.f32 %v432_v40, %v394_v29  ;;  %517 = vperm.xlu0 %817, %v1223_v39  }
 0x291   :  { %442 = vst [vmem:[#allocation11 + $0x38] sm:$0xff] %v1225_v41  ;;  %v456_v42 = vmax.f32 %v1202_v28, %v1225_v41 }
 0x292   :  { %728 = dma.vmem_to_hbm [thread:$0]  %s721_s21, 1024, %s723_s19, [#allocation10], %s1046_s29, %s1046_s29, %s1047_s30  }
 0x293   :  { %457 = vmax.xlane.f32.xlu2 %v456_v42  ;;  %s1054_s30 = smov [#allocation8]  }
 0x294   :  { %s699_s0 = sshll.u32 %s1054_s30, 4  ;;  %s700_s0 = int_to_ptr.vmem [resolvable:$true] %s699_s0 }
 0x29c   :  { %511 = vperm.xlu1 %818, %v1234_v44  }
 0x2ab   :  { %514 = vperm.xlu2 %819, %v1240_v45  }
 0x2b6   :  { %v652_v46 = vpop.f32.mrf.mxu0 }
 0x2b7   :  { %v1243_v47 = vmul.f32 20.0, %v652_v46 }
 0x2b9   :  { %657 = vst.msk [vmem:[#allocation12] sm:$0xf] %vm656_vm12, %v1243_v47  ;;  %v665_v48 = vsel %vm656_vm12, %v1243_v47, -inf  ;;  %v661_v40 = vsel %vm660_vm5, %v1243_v47, 0.0 }
 0x2ba   :  { %739 = dma.vmem_to_hbm [thread:$0]  %s735_s22, 64, %s737_s25, [#allocation13]  }
 0x2c6   :  { %666 = vmax.xlane.f32.xlu1 %v665_v48  ;;  %v794_v48 = vsel %vm548_vm7, 1.0, %v1050_v58 }
 0x2ee   :  { %v1249_v50 = vpop.xlane.xlu0 %448 }
 0x2ef   :  { %v459_v51 = vsub.f32 %v1193_v23, %v1249_v50  ;;  %v460_v52 = vsub.f32 %v1205_v31, %v1249_v50 }
 0x2f1   :  { %v467_v53 = vmul.f32 1.442695, %v459_v51  ;;  %v469_v54 = vmul.f32 1.442695, %v460_v52  ;;  %v795_v52 = vsel %vm549_vm9, 1.0, %v1050_v58 }
 0x2f2   :  { %v588_v43 = vsel %vm567_vm8, %v795_v52, 0.0 }
 0x2f3   :  { %833 = vpow2.f32 %v467_v53 }
 0x2f4   :  { %835 = vpow2.f32 %v469_v54  ;;  %v796_v54 = vsel %vm550_vm10, 1.0, %v1050_v58 }
 0x2f6   :  { %v1255_v55 = vpop.xlane.xlu1 %451 }
 0x2f7   :  { %v461_v56 = vsub.f32 %v1196_v25, %v1255_v55  ;;  %v462_v57 = vsub.f32 %v1210_v34, %v1255_v55 }
 0x2f9   :  { %v834_v59 = vpop.eup %833  ;;  %v471_v62 = vmul.f32 1.442695, %v461_v56  ;;  %v473_v63 = vmul.f32 1.442695, %v462_v57  ;;  %v590_v57 = vsel %vm567_vm8, %v796_v54, 0.0 }
 0x2fa   :  { %v836_v0 = vpop.eup %835 }
 0x2fb   :  { %837 = vpow2.f32 %v471_v62  ;;  %v483_v1 = vadd.f32 %v836_v0, %v834_v59 }
 0x2fc   :  { %839 = vpow2.f32 %v473_v63 }
 0x2fd   :  { %484 = vadd.xlane.f32.xlu0 %v483_v1 }
 0x2fe   :  { %v1261_v2 = vpop.xlane.xlu2 %454 }
 0x2ff   :  { %v463_v3 = vsub.f32 %v1199_v27, %v1261_v2  ;;  %v464_v4 = vsub.f32 %v1215_v37, %v1261_v2 }
 0x301   :  { %v838_v5 = vpop.eup %837  ;;  %v475_v6 = vmul.f32 1.442695, %v463_v3  ;;  %v477_v8 = vmul.f32 1.442695, %v464_v4  ;;  %v518_v19 = vpop.permute.xlu0 %517 }
 0x302   :  { %v840_v9 = vpop.eup %839  ;;  %vm525_vm15 = vcmp.eq.s32.totalorder %v1153_v60, %v518_v19  ;;  %vm526_vm0 = vcmp.eq.s32.totalorder %v1156_v61, %v518_v19 }
 0x303   :  { %841 = vpow2.f32 %v475_v6  ;;  %v486_v10 = vadd.f32 %v840_v9, %v838_v5  ;;  %v533_v30 = vsel %vm525_vm15, %v1202_v28, 0.0  ;;  %v534_v31 = vsel %vm526_vm0, %v1225_v41, 0.0 }
 0x304   :  { %843 = vpow2.f32 %v477_v8  ;;  %v544_v36 = vadd.f32 %v534_v31, %v533_v30  ;;  %vm692_vm0 = vcmask 0  }
 0x305   :  { %487 = vadd.xlane.f32.xlu2 %v486_v10 }
 0x306   :  { %v1267_v11 = vpop.xlane.xlu2 %457 }
 0x307   :  { %v465_v12 = vsub.f32 %v1202_v28, %v1267_v11  ;;  %v466_v13 = vsub.f32 %v1225_v41, %v1267_v11  ;;  %v662_v41 = vsel %vm656_vm12, %v661_v40, 0.0 }
 0x309   :  { %v842_v15 = vpop.eup %841  ;;  %v479_v16 = vmul.f32 1.442695, %v465_v12  ;;  %v481_v17 = vmul.f32 1.442695, %v466_v13 }
 0x30a   :  { %v844_v7 = vpop.eup %843 }
 0x30b   :  { %845 = vpow2.f32 %v479_v16  ;;  %v489_v21 = vadd.f32 %v844_v7, %v842_v15 }
 0x30c   :  { %847 = vpow2.f32 %v481_v17 }
 0x30d   :  { %490 = vadd.xlane.f32.xlu1 %v489_v21  ;;  %536 = vadd.xlane.f32.xlu2 %v535_v22 }
 0x30e   :  { %v512_v24 = vpop.permute.xlu1 %511  ;;  %v515_v33 = vpop.permute.xlu2 %514 }
 0x30f   :  { %vm521_vm1 = vcmp.eq.s32.totalorder %v1153_v60, %v512_v24  ;;  %vm522_vm2 = vcmp.eq.s32.totalorder %v1156_v61, %v512_v24  ;;  %vm523_vm3 = vcmp.eq.s32.totalorder %v1153_v60, %v515_v33  ;;  %vm524_vm4 = vcmp.eq.s32.totalorder %v1156_v61, %v515_v33 }
 0x310   :  { %v529_v26 = vsel %vm521_vm1, %v1196_v25, 0.0  ;;  %v530_v23 = vsel %vm522_vm2, %v1210_v34, 0.0  ;;  %v531_v25 = vsel %vm523_vm3, %v1199_v27, 0.0  ;;  %v532_v34 = vsel %vm524_vm4, %v1215_v37, 0.0 }
 0x311   :  { %v846_v20 = vpop.eup %845  ;;  %v538_v29 = vadd.f32 %v530_v23, %v529_v26  ;;  %v541_v28 = vadd.f32 %v532_v34, %v531_v25  ;;  %v793_v60 = vsel %vm547_vm6, 1.0, %v1050_v58 }
 0x312   :  { %v848_v32 = vpop.eup %847  ;;  %v585_v51 = vsel %vm567_vm8, %v793_v60, 0.0 }
 0x313   :  { %v492_v35 = vadd.f32 %v848_v32, %v846_v20 }
 0x315   :  { %539 = vadd.xlane.f32.xlu1 %v538_v29  ;;  %493 = vadd.xlane.f32.xlu0 %v492_v35 }
 0x316   :  { %545 = vadd.xlane.f32.xlu2 %v544_v36 }
 0x31d   :  { %542 = vadd.xlane.f32.xlu0 %v541_v28 }
 0x325   :  { %663 = vadd.xlane.f32.xlu0 %v662_v41 }
 0x339   :  { %v1293_v42 = vpop.xlane.xlu1 %666 }
 0x33a   :  { %v668_v61 = vsub.f32 %v1243_v47, %v1293_v42  ;;  %v586_v47 = vsel %vm567_vm8, %v794_v48, 0.0 }
 0x33b   :  { %v587_v53 = vadd.f32 %v586_v47, %v585_v51 }
 0x33c   :  { %v669_v46 = vmul.f32 1.442695, %v668_v61 }
 0x33d   :  { %v589_v56 = vadd.f32 %v588_v43, %v587_v53 }
 0x33e   :  { %849 = vpow2.f32 %v669_v46 }
 0x33f   :  { %v591_v59 = vadd.f32 %v590_v57, %v589_v56 }
 0x344   :  { %v850_v27 = vpop.eup %849 }
 0x345   :  { %v671_v37 = vsel %vm656_vm12, %v850_v27, 0.0 }
 0x346   :  { %672 = vadd.xlane.f32.xlu1 %v671_v37 }
 0x34e   :  { %592 = vadd.xlane.f32.xlu1 %v591_v59 }
 0x370   :  { %v485_v49 = vpop.xlane.xlu0 %484 }
 0x371   :  { %851 = vlog2.f32 %v485_v49 }
 0x377   :  { %v852_v45 = vpop.eup %851 }
 0x378   :  { %v488_v44 = vpop.xlane.xlu2 %487  ;;  %v496_v62 = vmul.f32 0.6931472, %v852_v45 }
 0x379   :  { %853 = vlog2.f32 %v488_v44 }
 0x37a   :  { %v503_v3 = vadd.f32 %v496_v62, %v1249_v50 }
 0x37f   :  { %v854_v63 = vpop.eup %853 }
 0x380   :  { %v491_v0 = vpop.xlane.xlu1 %490  ;;  %v537_v1 = vpop.xlane.xlu2 %536  ;;  %v498_v39 = vmul.f32 0.6931472, %v854_v63 }
 0x381   :  { %855 = vlog2.f32 %v491_v0  ;;  %v559_v4 = vsub.f32 %v503_v3, %v537_v1 }
 0x382   :  { %v504_v5 = vadd.f32 %v498_v39, %v1255_v55 }
 0x383   :  { %v563_v10 = vmul.f32 %v793_v60, %v559_v4 }
 0x385   :  { %v568_v15 = vsel %vm567_vm8, %v563_v10, 0.0 }
 0x387   :  { %v856_v6 = vpop.eup %855 }
 0x388   :  { %v540_v8 = vpop.xlane.xlu1 %539  ;;  %v494_v9 = vpop.xlane.xlu0 %493  ;;  %v500_v13 = vmul.f32 0.6931472, %v856_v6 }
 0x389   :  { %v560_v12 = vsub.f32 %v504_v5, %v540_v8  ;;  %857 = vlog2.f32 %v494_v9  ;;  %v546_v22 = vpop.xlane.xlu2 %545 }
 0x38a   :  { %v505_v18 = vadd.f32 %v500_v13, %v1261_v2 }
 0x38b   :  { %v564_v14 = vmul.f32 %v794_v48, %v560_v12 }
 0x38d   :  { %v569_v16 = vsel %vm567_vm8, %v564_v14, 0.0 }
 0x38e   :  { %v570_v17 = vadd.f32 %v569_v16, %v568_v15 }
 0x38f   :  { %v858_v7 = vpop.eup %857 }
 0x390   :  { %v502_v50 = vmul.f32 0.6931472, %v858_v7  ;;  %v543_v19 = vpop.xlane.xlu0 %542 }
 0x391   :  { %v561_v21 = vsub.f32 %v505_v18, %v543_v19 }
 0x392   :  { %v506_v55 = vadd.f32 %v502_v50, %v1267_v11 }
 0x393   :  { %v565_v24 = vmul.f32 %v795_v52, %v561_v21 }
 0x394   :  { %v562_v26 = vsub.f32 %v506_v55, %v546_v22 }
 0x395   :  { %v571_v23 = vsel %vm567_vm8, %v565_v24, 0.0 }
 0x396   :  { %v566_v20 = vmul.f32 %v796_v54, %v562_v26  ;;  %v572_v29 = vadd.f32 %v571_v23, %v570_v17 }
 0x398   :  { %v573_v30 = vsel %vm567_vm8, %v566_v20, 0.0  ;;  %v664_v36 = vpop.xlane.xlu0 %663 }
 0x399   :  { %v574_v31 = vadd.f32 %v573_v30, %v572_v29 }
 0x39b   :  { %575 = vadd.xlane.f32.xlu2 %v574_v31 }
 0x3b9   :  { %v673_v32 = vpop.xlane.xlu1 %672 }
 0x3ba   :  { %859 = vlog2.f32 %v673_v32 }
 0x3c0   :  { %v860_v33 = vpop.eup %859 }
 0x3c1   :  { %v675_v2 = vmul.f32 0.6931472, %v860_v33  ;;  %v593_v34 = vpop.xlane.xlu1 %592 }
 0x3c2   :  { %v594_v38 = vrot.slane %v593_v34, 4 }
 0x3c3   :  { %v676_v35 = vadd.f32 %v675_v2, %v1293_v42 }
 0x3c4   :  { %v595_v28 = vadd.f32 %v594_v38, %v593_v34 }
 0x3c5   :  { %v677_v11 = vsub.f32 %v676_v35, %v664_v36 }
 0x3c6   :  { %v596_v40 = vrot.slane %v595_v28, 2 }
 0x3c7   :  { %v679_v25 = vsel %vm678_vm11, %v677_v11, 0.0 }
 0x3c8   :  { %680 = vadd.xlane.f32.xlu0 %v679_v25  ;;  %v597_v61 = vadd.f32 %v596_v40, %v595_v28 }
 0x3ca   :  { %v598_v37 = vrot.slane %v597_v61, 1 }
 0x3cc   :  { %v599_v48 = vadd.f32 %v598_v37, %v597_v61 }
 0x40e   :  { %v576_v41 = vpop.xlane.xlu2 %575 }
 0x40f   :  { %v577_v42 = vrot.slane %v576_v41, 4 }
 0x411   :  { %v578_v46 = vadd.f32 %v577_v42, %v576_v41 }
 0x413   :  { %v579_v27 = vrot.slane %v578_v46, 2 }
 0x415   :  { %v580_v58 = vadd.f32 %v579_v27, %v578_v46 }
 0x417   :  { %v581_v60 = vrot.slane %v580_v58, 1 }
 0x419   :  { %v582_v49 = vadd.f32 %v581_v60, %v580_v58 }
 0x41b   :  { %797 = vpush %v582_v49 }
 0x41c   :  { %799 = vpush %v599_v48 }
 0x43b   :  { %v681_v51 = vpop.xlane.xlu0 %680 }
 0x43c   :  { %v682_v47 = vrot.slane %v681_v51, 4 }
 0x43e   :  { %v683_v52 = vadd.f32 %v682_v47, %v681_v51 }
 0x440   :  { %v684_v53 = vrot.slane %v683_v52, 2 }
 0x442   :  { %v685_v54 = vadd.f32 %v684_v53, %v683_v52 }
 0x444   :  { %v686_v43 = vrot.slane %v685_v54, 1 }
 0x446   :  { %v687_v44 = vadd.f32 %v686_v43, %v685_v54 }
 0x448   :  { %801 = vpush %v687_v44 }
 0x44c   :  { %s798_s9 = spop %797 }
 0x44d   :  { %s800_s10 = spop %799  ;;  %v584_v6 = vstv %s798_s9 }
 0x44e   :  { %v601_v56 = vstv %s800_s10 }
 0x44f   :  { %v602_v57 = vmax.f32 %v601_v56, 1.0 }
 0x451   :  { %861 = vrcp.f32 %v602_v57  ;;  %vm608_vm12 = vweird.f32 %v602_v57  ;;  %v614_v0 = vand.u32 2147483648, %v602_v57  ;;  %v612_v39 = vand.u32 2147483647, %v602_v57 }
 0x453   :  { %v615_v3 = vor.u32 1.1754944e-38, %v614_v0  ;;  %vm613_vm15 = vcmp.eq.f32.partialorder %v612_v39, 8.507059e+37 }
 0x457   :  { %v862_v59 = vpop.eup %861 }
 0x458   :  { %v604_v45 = vmul.f32 %v862_v59, %v602_v57  ;;  %vm609_vm13 = vweird.f32 %v862_v59 }
 0x459   :  { %vm610_vm14 = vmor %vm608_vm12, %vm609_vm13 }
 0x45a   :  { %v605_v62 = vsub.f32 1.0, %v604_v45 }
 0x45c   :  { %v606_v63 = vmul.f32 %v862_v59, %v605_v62 }
 0x45e   :  { %v607_v1 = vadd.f32 %v862_v59, %v606_v63 }
 0x460   :  { %v611_v4 = vsel %vm610_vm14, %v862_v59, %v607_v1 }
 0x461   :  { %v616_v5 = vsel %vm613_vm15, %v615_v3, %v611_v4 }
 0x462   :  { %v617_v9 = vmul.f32 %v616_v5, %v584_v6 }
 0x479   :  { %s802_s29 = spop %801 }
 0x47a   :  { %v689_v8 = vstv %s802_s29 }
 0x47b   :  { %v690_v10 = vmul.f32 0.5, %v689_v8 }
 0x47d   :  { %v691_v12 = vadd.f32 %v690_v10, %v617_v9 }
 0x47f   :  { %693 = vst.msk [vmem:[#allocation8] sm:$0x1] %vm692_vm0, %v691_v12 }
 0x480   :  { %704 = dma.vmem_to_hbm [thread:$0]  %s700_s0, 16, %s702_s4, [#allocation4]  }
 0x481   :  { %1035 = dma.done.wait [#allocation4], 16  }
 0x482   :  { %1036 = vsyncadd [#allocation4], 4294967280 }
 0x483   :  { %1037 = dma.done.wait [#allocation10], 1088  }
 0x484   :  { %1038 = vsyncadd [#allocation10], 4294966208 }
 0x485   :  { %1039 = dma.done.wait [#allocation13], 64  }
 0x486   :  { %1040 = vsyncadd [#allocation13], 4294967232 }
 0x487   :  { %756 = vsyncpa [#allocation3], 1 }
 0x488   :  { %757 = vsyncpa [#allocation6], 1 }
 0x489   :  { %758 = vsyncpa [#allocation4], 1 }
 0x48a   :  { %759 = vsyncpa [#allocation10], 1 }
 0x48b   :  { %760 = vsyncpa [#allocation13], 1 }

</bundles_post_ra>
